<compile_context>
chip_gen: v5e
topology: v5e:2x2
jax: 0.10.0
libtpu: 0.0.40
codegen_flags: <defaults>
</compile_context>

<pallas_src>
import math

import jax
import jax.numpy as jnp
from jax.experimental import pallas as pl
from jax.experimental.pallas import tpu as pltpu

_GELU_C = math.sqrt(2.0 / math.pi)


def mlp_kernel(x_ref, w_fc_ref, b_fc_ref, w_proj_ref, b_proj_ref, o_ref):
    """One row-tile: out = GELU_tanh(x @ Wfc_t + bfc) @ Wproj_t + bproj."""
    x = x_ref[...]                                      # (tm, Cp), compute dtype (bf16)

    # c_fc: (tm, Cp) @ (Cp, Hp). RHS pre-transposed -> K on its sublane axis,
    # no in-kernel weight relayout; accumulate on the MXU in f32.
    h = jnp.dot(x, w_fc_ref[...], preferred_element_type=jnp.float32)
    h = h + b_fc_ref[...]                               # bias kept in f32

    # GELU, tanh approximation (matches nn.GELU(approximate='tanh')), in f32.
    # Polynomial is VPU work; tanh issues on the EUP slot.
    act = 0.5 * h * (1.0 + jnp.tanh(_GELU_C * (h + 0.044715 * (h * h * h))))

    # c_proj: feed the MXU in the weight dtype, accumulate in f32.
    act = act.astype(w_proj_ref.dtype)
    out = jnp.dot(act, w_proj_ref[...], preferred_element_type=jnp.float32)
    out = out + b_proj_ref[...]

    # Dropout is identity in eval mode (p = 0.0 / model.eval()).
    o_ref[...] = out.astype(o_ref.dtype)


def _round_up(x, m):
    return ((x + m - 1) // m) * m


def _choose_tm(M, block_rows, g):
    """Row-tile size: >=2 grid steps when feasible, MXU-friendly multiples."""
    if M <= g:
        return M                                        # one short tile == full row dim
    if M <= 2 * 256:
        return max(g, _round_up(pl.cdiv(M, 2), g))      # at least 2 grid steps
    tm = min(block_rows, _round_up(pl.cdiv(M, 4), 256))
    return max(256, (tm // 256) * 256)                  # multiples of 256, >=4 steps


def _vmem_capacity_bytes():
    try:
        return int(pltpu.get_tpu_info().vmem_capacity_bytes)
    except Exception:
        return 64 << 20                                 # conservative (v7x per-core VMEM)


def mlp(x, w_fc, b_fc, w_proj, b_proj, *, block_rows=512,
        compute_dtype=jnp.bfloat16):
    """x: (B, T, C); w_fc: (4C, C); b_fc: (4C,); w_proj: (C, 4C); b_proj: (C,)."""
    B, T, C = x.shape
    H = w_fc.shape[0]                                   # 4C
    M = B * T
    out_dtype = x.dtype

    # Lane-dense layouts: pad C and 4C up to multiples of 128 (no-op for real GPT widths).
    Cp = _round_up(C, 128)
    Hp = _round_up(H, 128)

    # One-time XLA-side layout prep (outside the kernel, amortized over all grid steps).
    x2 = x.reshape(M, C).astype(compute_dtype)
    w_fc_t = jnp.transpose(w_fc).astype(compute_dtype)      # (C, 4C)
    w_proj_t = jnp.transpose(w_proj).astype(compute_dtype)  # (4C, C)
    b_fc2 = b_fc.astype(jnp.float32).reshape(1, H)
    b_proj2 = b_proj.astype(jnp.float32).reshape(1, C)
    if Cp != C:
        x2 = jnp.pad(x2, ((0, 0), (0, Cp - C)))
        w_fc_t = jnp.pad(w_fc_t, ((0, Cp - C), (0, 0)))
        w_proj_t = jnp.pad(w_proj_t, ((0, 0), (0, Cp - C)))
        b_proj2 = jnp.pad(b_proj2, ((0, 0), (0, Cp - C)))
    if Hp != H:
        w_fc_t = jnp.pad(w_fc_t, ((0, 0), (0, Hp - H)))
        w_proj_t = jnp.pad(w_proj_t, ((0, Hp - H), (0, 0)))
        b_fc2 = jnp.pad(b_fc2, ((0, 0), (0, Hp - H)))

    # Row tile: sublane granularity 16 for packed (bf16) operands, 8 for f32.
    g = 16 if jnp.dtype(compute_dtype).itemsize < 4 else 8
    tm = _choose_tm(M, block_rows, g)
    grid = (pl.cdiv(M, tm),)

    # Explicit VMEM budget: resident weights (+ pipeline buffers) + row tiles +
    # f32 intermediates, capped safely below this generation's physical VMEM.
    cdt = jnp.dtype(compute_dtype).itemsize
    odt = jnp.dtype(out_dtype).itemsize
    wbytes = (w_fc_t.size + w_proj_t.size) * cdt
    need = (2 * wbytes                                  # up to two weight buffers
            + 2 * tm * Cp * (cdt + odt)                 # double-buffered in/out row tiles
            + 3 * tm * Hp * 4                           # f32 h/act intermediates + headroom
            + (2 << 20))
    vmem_limit = int(min(int(0.9 * _vmem_capacity_bytes()), max(need, 32 << 20)))

    cost = pl.CostEstimate(
        flops=4 * M * C * H,
        transcendentals=M * H,
        bytes_accessed=int(x2.size * cdt + w_fc_t.size * cdt + w_proj_t.size * cdt
                           + b_fc2.size * 4 + b_proj2.size * 4 + M * Cp * odt),
    )

    def run(single_buffer_weights):
        # Constant-index weights need only a single VMEM buffer (halves resident
        # weight footprint -- matters most on v7x's 64 MiB VMEM).
        wkw = {"pipeline_mode": pl.Buffered(1)} if single_buffer_weights else {}
        return pl.pallas_call(
            mlp_kernel,
            out_shape=jax.ShapeDtypeStruct((M, Cp), out_dtype),
            grid=grid,
            in_specs=[
                pl.BlockSpec((tm, Cp), lambda i: (i, 0)),          # activations (pipelined)
                pl.BlockSpec((Cp, Hp), lambda i: (0, 0), **wkw),   # c_fc weight (VMEM-resident)
                pl.BlockSpec((1, Hp), lambda i: (0, 0)),           # c_fc bias (f32)
                pl.BlockSpec((Hp, Cp), lambda i: (0, 0), **wkw),   # c_proj weight (VMEM-resident)
                pl.BlockSpec((1, Cp), lambda i: (0, 0)),           # c_proj bias (f32)
            ],
            out_specs=pl.BlockSpec((tm, Cp), lambda i: (i, 0)),
            compiler_params=pltpu.CompilerParams(
                dimension_semantics=("parallel",),
                vmem_limit_bytes=vmem_limit),
            cost_estimate=cost,
        )(x2, w_fc_t, b_fc2, w_proj_t, b_proj2)

    try:
        out2 = jax.block_until_ready(run(True))
    except Exception:
        # Fallback for JAX versions without BlockSpec(pipeline_mode=...) support.
        out2 = run(False)

    if Cp != C:
        out2 = out2[:, :C]
    return out2.reshape(B, T, C)


def reference(x, w_fc, b_fc, w_proj, b_proj):
    """Pure-JAX mirror of the PyTorch MLP forward (eval mode)."""
    h = x @ w_fc.T + b_fc
    act = 0.5 * h * (1.0 + jnp.tanh(_GELU_C * (h + 0.044715 * h ** 3)))
    return act @ w_proj.T + b_proj


if __name__ == "__main__":
    # nanoGPT-style small config: n_embd=32 (hidden 4*n_embd=128), bias=True,
    # dropout=0.0 (eval), batch=2, seq=16  => M=32 rows (2 grid steps of 16).
    B, T, C = 2, 16, 32
    H = 4 * C

    key = jax.random.PRNGKey(0)
    kx, kwf, kbf, kwp, kbp = jax.random.split(key, 5)

    x = jax.random.normal(kx, (B, T, C), dtype=jnp.float32)
    w_fc = 0.02 * jax.random.normal(kwf, (H, C), dtype=jnp.float32)
    b_fc = 0.01 * jax.random.normal(kbf, (H,), dtype=jnp.float32)
    w_proj = 0.02 * jax.random.normal(kwp, (C, H), dtype=jnp.float32)
    b_proj = 0.01 * jax.random.normal(kbp, (C,), dtype=jnp.float32)

    out = mlp(x, w_fc, b_fc, w_proj, b_proj)
    out = jax.block_until_ready(out)
    assert out.shape == (B, T, C)

    # Reference on bf16-rounded operands (kernel feeds the MXU bf16, accumulates in f32).
    r32 = lambda a: a.astype(jnp.bfloat16).astype(jnp.float32)
    ref_bf16 = reference(r32(x), r32(w_fc), b_fc, r32(w_proj), b_proj)
    assert jnp.allclose(out, ref_bf16, atol=5e-3, rtol=1e-2), "mismatch vs bf16-rounded reference"

    # Loose check against the full-precision reference (only bf16 operand rounding differs).
    ref_f32 = reference(x, w_fc, b_fc, w_proj, b_proj)
    assert jnp.allclose(out, ref_f32, atol=2e-2, rtol=2e-2), "mismatch vs f32 reference"

    # TODO(synk): train-mode nn.Dropout (RNG masking) not implemented; forward is eval-mode.
    print("KERNEL_OK")
</pallas_src>

<mosaic_0001>
module attributes {stable_mosaic.version = 11 : i64} {
  func.func @mlp_kernel(%arg0: i32, %arg1: memref<16x128xbf16, #tpu.memory_space<vmem>>, %arg2: memref<128x128xbf16, #tpu.memory_space<vmem>>, %arg3: memref<1x128xf32, #tpu.memory_space<vmem>>, %arg4: memref<128x128xbf16, #tpu.memory_space<vmem>>, %arg5: memref<1x128xf32, #tpu.memory_space<vmem>>, %arg6: memref<16x128xf32, #tpu.memory_space<vmem>>) attributes {dimension_semantics = [#tpu.dimension_semantics<parallel>], iteration_bounds = array<i64: 2>, scalar_prefetch = 0 : i64, scratch_operands = 0 : i64, tpu.core_type = #tpu.core_type<tc>, window_params = [{transform_indices = @transform_0, window_bounds = array<i64: 16, 128>}, {pipeline_mode = #tpu.pipeline_mode<synchronous>, transform_indices = @transform_1, window_bounds = array<i64: 128, 128>}, {pipeline_mode = #tpu.pipeline_mode<synchronous>, transform_indices = @transform_2, window_bounds = array<i64: 1, 128>}, {pipeline_mode = #tpu.pipeline_mode<synchronous>, transform_indices = @transform_3, window_bounds = array<i64: 128, 128>}, {pipeline_mode = #tpu.pipeline_mode<synchronous>, transform_indices = @transform_4, window_bounds = array<i64: 1, 128>}, {transform_indices = @transform_5, window_bounds = array<i64: 16, 128>}]} {
    %c0 = arith.constant 0 : index
    %c0_0 = arith.constant 0 : index
    %0 = vector.load %arg1[%c0, %c0_0] : memref<16x128xbf16, #tpu.memory_space<vmem>>, vector<16x128xbf16>
    %c0_1 = arith.constant 0 : index
    %c0_2 = arith.constant 0 : index
    %1 = vector.load %arg2[%c0_1, %c0_2] : memref<128x128xbf16, #tpu.memory_space<vmem>>, vector<128x128xbf16>
    %cst = arith.constant dense<0.000000e+00> : vector<16x128xf32>
    %2 = tpu.matmul %0, %1, %cst {dimension_numbers = #tpu.dot_dimension_numbers<[1], [0], [0], [1], [0, 0, 1, 1], [], []>} : vector<16x128xbf16>, vector<128x128xbf16>, vector<16x128xf32> -> vector<16x128xf32>
    %c0_3 = arith.constant 0 : index
    %c0_4 = arith.constant 0 : index
    %3 = vector.load %arg3[%c0_3, %c0_4] : memref<1x128xf32, #tpu.memory_space<vmem>>, vector<1x128xf32>
    %4 = vector.broadcast %3 : vector<1x128xf32> to vector<16x128xf32>
    %5 = arith.addf %2, %4 : vector<16x128xf32>
    %cst_5 = arith.constant 5.000000e-01 : f32
    %6 = vector.broadcast %cst_5 : f32 to vector<16x128xf32>
    %7 = arith.mulf %6, %5 : vector<16x128xf32>
    %8 = arith.mulf %5, %5 : vector<16x128xf32>
    %9 = arith.mulf %8, %5 : vector<16x128xf32>
    %cst_6 = arith.constant 4.471500e-02 : f32
    %10 = vector.broadcast %cst_6 : f32 to vector<16x128xf32>
    %11 = arith.mulf %10, %9 : vector<16x128xf32>
    %12 = arith.addf %5, %11 : vector<16x128xf32>
    %cst_7 = arith.constant 0.797884583 : f32
    %13 = vector.broadcast %cst_7 : f32 to vector<16x128xf32>
    %14 = arith.mulf %13, %12 : vector<16x128xf32>
    %15 = math.tanh %14 : vector<16x128xf32>
    %cst_8 = arith.constant 1.000000e+00 : f32
    %16 = vector.broadcast %cst_8 : f32 to vector<16x128xf32>
    %17 = arith.addf %16, %15 : vector<16x128xf32>
    %18 = arith.mulf %7, %17 : vector<16x128xf32>
    %19 = arith.truncf %18 : vector<16x128xf32> to vector<16x128xbf16>
    %c0_9 = arith.constant 0 : index
    %c0_10 = arith.constant 0 : index
    %20 = vector.load %arg4[%c0_9, %c0_10] : memref<128x128xbf16, #tpu.memory_space<vmem>>, vector<128x128xbf16>
    %cst_11 = arith.constant dense<0.000000e+00> : vector<16x128xf32>
    %21 = tpu.matmul %19, %20, %cst_11 {dimension_numbers = #tpu.dot_dimension_numbers<[1], [0], [0], [1], [0, 0, 1, 1], [], []>} : vector<16x128xbf16>, vector<128x128xbf16>, vector<16x128xf32> -> vector<16x128xf32>
    %c0_12 = arith.constant 0 : index
    %c0_13 = arith.constant 0 : index
    %22 = vector.load %arg5[%c0_12, %c0_13] : memref<1x128xf32, #tpu.memory_space<vmem>>, vector<1x128xf32>
    %23 = vector.broadcast %22 : vector<1x128xf32> to vector<16x128xf32>
    %24 = arith.addf %21, %23 : vector<16x128xf32>
    %c0_14 = arith.constant 0 : index
    %c0_15 = arith.constant 0 : index
    %25 = vector.load %arg6[%c0_14, %c0_15] : memref<16x128xf32, #tpu.memory_space<vmem>>, vector<16x128xf32>
    tpu.vector_store %arg6[%c0_14, %c0_15], %24 {strides = array<i32>} : memref<16x128xf32, #tpu.memory_space<vmem>>, vector<16x128xf32>,
    return
  }
  func.func @transform_0(%arg0: i32) -> (i32, i32) {
    %c0_i32 = arith.constant 0 : i32
    %c0_i32_0 = arith.constant 0 : i32
    return %arg0, %c0_i32 : i32, i32
  }
  func.func @transform_1(%arg0: i32) -> (i32, i32) {
    %c0_i32 = arith.constant 0 : i32
    %c0_i32_0 = arith.constant 0 : i32
    %c0_i32_1 = arith.constant 0 : i32
    return %c0_i32, %c0_i32_0 : i32, i32
  }
  func.func @transform_2(%arg0: i32) -> (i32, i32) {
    %c0_i32 = arith.constant 0 : i32
    %c0_i32_0 = arith.constant 0 : i32
    %c0_i32_1 = arith.constant 0 : i32
    return %c0_i32, %c0_i32_0 : i32, i32
  }
  func.func @transform_3(%arg0: i32) -> (i32, i32) {
    %c0_i32 = arith.constant 0 : i32
    %c0_i32_0 = arith.constant 0 : i32
    %c0_i32_1 = arith.constant 0 : i32
    return %c0_i32, %c0_i32_0 : i32, i32
  }
  func.func @transform_4(%arg0: i32) -> (i32, i32) {
    %c0_i32 = arith.constant 0 : i32
    %c0_i32_0 = arith.constant 0 : i32
    %c0_i32_1 = arith.constant 0 : i32
    return %c0_i32, %c0_i32_0 : i32, i32
  }
  func.func @transform_5(%arg0: i32) -> (i32, i32) {
    %c0_i32 = arith.constant 0 : i32
    %c0_i32_0 = arith.constant 0 : i32
    return %arg0, %c0_i32 : i32, i32
  }
}

module attributes {stable_mosaic.version = 11 : i64} {
  func.func @mlp_kernel(%arg0: i32, %arg1: memref<16x128xbf16, #tpu.memory_space<vmem>>, %arg2: memref<128x128xbf16, #tpu.memory_space<vmem>>, %arg3: memref<1x128xf32, #tpu.memory_space<vmem>>, %arg4: memref<128x128xbf16, #tpu.memory_space<vmem>>, %arg5: memref<1x128xf32, #tpu.memory_space<vmem>>, %arg6: memref<16x128xf32, #tpu.memory_space<vmem>>) attributes {dimension_semantics = [#tpu.dimension_semantics<parallel>], iteration_bounds = array<i64: 2>, scalar_prefetch = 0 : i64, scratch_operands = 0 : i64, tpu.core_type = #tpu.core_type<tc>, window_params = [{transform_indices = @transform_0, window_bounds = array<i64: 16, 128>}, {pipeline_mode = #tpu.pipeline_mode<synchronous>, transform_indices = @transform_1, window_bounds = array<i64: 128, 128>}, {pipeline_mode = #tpu.pipeline_mode<synchronous>, transform_indices = @transform_2, window_bounds = array<i64: 1, 128>}, {pipeline_mode = #tpu.pipeline_mode<synchronous>, transform_indices = @transform_3, window_bounds = array<i64: 128, 128>}, {pipeline_mode = #tpu.pipeline_mode<synchronous>, transform_indices = @transform_4, window_bounds = array<i64: 1, 128>}, {transform_indices = @transform_5, window_bounds = array<i64: 16, 128>}]} {
    %c0 = arith.constant 0 : index
    %c0_0 = arith.constant 0 : index
    %0 = vector.load %arg1[%c0, %c0_0] : memref<16x128xbf16, #tpu.memory_space<vmem>>, vector<16x128xbf16>
    %c0_1 = arith.constant 0 : index
    %c0_2 = arith.constant 0 : index
    %1 = vector.load %arg2[%c0_1, %c0_2] : memref<128x128xbf16, #tpu.memory_space<vmem>>, vector<128x128xbf16>
    %cst = arith.constant dense<0.000000e+00> : vector<16x128xf32>
    %2 = tpu.matmul %0, %1, %cst {dimension_numbers = #tpu.dot_dimension_numbers<[1], [0], [0], [1], [0, 0, 1, 1], [], []>} : vector<16x128xbf16>, vector<128x128xbf16>, vector<16x128xf32> -> vector<16x128xf32>
    %c0_3 = arith.constant 0 : index
    %c0_4 = arith.constant 0 : index
    %3 = vector.load %arg3[%c0_3, %c0_4] : memref<1x128xf32, #tpu.memory_space<vmem>>, vector<1x128xf32>
    %4 = vector.broadcast %3 : vector<1x128xf32> to vector<16x128xf32>
    %5 = arith.addf %2, %4 : vector<16x128xf32>
    %cst_5 = arith.constant 5.000000e-01 : f32
    %6 = vector.broadcast %cst_5 : f32 to vector<16x128xf32>
    %7 = arith.mulf %6, %5 : vector<16x128xf32>
    %8 = arith.mulf %5, %5 : vector<16x128xf32>
    %9 = arith.mulf %8, %5 : vector<16x128xf32>
    %cst_6 = arith.constant 4.471500e-02 : f32
    %10 = vector.broadcast %cst_6 : f32 to vector<16x128xf32>
    %11 = arith.mulf %10, %9 : vector<16x128xf32>
    %12 = arith.addf %5, %11 : vector<16x128xf32>
    %cst_7 = arith.constant 0.797884583 : f32
    %13 = vector.broadcast %cst_7 : f32 to vector<16x128xf32>
    %14 = arith.mulf %13, %12 : vector<16x128xf32>
    %15 = math.tanh %14 : vector<16x128xf32>
    %cst_8 = arith.constant 1.000000e+00 : f32
    %16 = vector.broadcast %cst_8 : f32 to vector<16x128xf32>
    %17 = arith.addf %16, %15 : vector<16x128xf32>
    %18 = arith.mulf %7, %17 : vector<16x128xf32>
    %19 = arith.truncf %18 : vector<16x128xf32> to vector<16x128xbf16>
    %c0_9 = arith.constant 0 : index
    %c0_10 = arith.constant 0 : index
    %20 = vector.load %arg4[%c0_9, %c0_10] : memref<128x128xbf16, #tpu.memory_space<vmem>>, vector<128x128xbf16>
    %cst_11 = arith.constant dense<0.000000e+00> : vector<16x128xf32>
    %21 = tpu.matmul %19, %20, %cst_11 {dimension_numbers = #tpu.dot_dimension_numbers<[1], [0], [0], [1], [0, 0, 1, 1], [], []>} : vector<16x128xbf16>, vector<128x128xbf16>, vector<16x128xf32> -> vector<16x128xf32>
    %c0_12 = arith.constant 0 : index
    %c0_13 = arith.constant 0 : index
    %22 = vector.load %arg5[%c0_12, %c0_13] : memref<1x128xf32, #tpu.memory_space<vmem>>, vector<1x128xf32>
    %23 = vector.broadcast %22 : vector<1x128xf32> to vector<16x128xf32>
    %24 = arith.addf %21, %23 : vector<16x128xf32>
    %c0_14 = arith.constant 0 : index
    %c0_15 = arith.constant 0 : index
    %25 = vector.load %arg6[%c0_14, %c0_15] : memref<16x128xf32, #tpu.memory_space<vmem>>, vector<16x128xf32>
    tpu.vector_store %arg6[%c0_14, %c0_15], %24 {strides = array<i32>} : memref<16x128xf32, #tpu.memory_space<vmem>>, vector<16x128xf32>,
    return
  }
  func.func @transform_0(%arg0: i32) -> (i32, i32) {
    %c0_i32 = arith.constant 0 : i32
    %c0_i32_0 = arith.constant 0 : i32
    return %arg0, %c0_i32 : i32, i32
  }
  func.func @transform_1(%arg0: i32) -> (i32, i32) {
    %c0_i32 = arith.constant 0 : i32
    %c0_i32_0 = arith.constant 0 : i32
    %c0_i32_1 = arith.constant 0 : i32
    return %c0_i32, %c0_i32_0 : i32, i32
  }
  func.func @transform_2(%arg0: i32) -> (i32, i32) {
    %c0_i32 = arith.constant 0 : i32
    %c0_i32_0 = arith.constant 0 : i32
    %c0_i32_1 = arith.constant 0 : i32
    return %c0_i32, %c0_i32_0 : i32, i32
  }
  func.func @transform_3(%arg0: i32) -> (i32, i32) {
    %c0_i32 = arith.constant 0 : i32
    %c0_i32_0 = arith.constant 0 : i32
    %c0_i32_1 = arith.constant 0 : i32
    return %c0_i32, %c0_i32_0 : i32, i32
  }
  func.func @transform_4(%arg0: i32) -> (i32, i32) {
    %c0_i32 = arith.constant 0 : i32
    %c0_i32_0 = arith.constant 0 : i32
    %c0_i32_1 = arith.constant 0 : i32
    return %c0_i32, %c0_i32_0 : i32, i32
  }
  func.func @transform_5(%arg0: i32) -> (i32, i32) {
    %c0_i32 = arith.constant 0 : i32
    %c0_i32_0 = arith.constant 0 : i32
    return %arg0, %c0_i32 : i32, i32
  }
}

</mosaic_0001>

<bundles_post_ra>
// kernel: tpu_custom_call.1
= control target key start
LH: loop header
LB: loop body
LE: loop exit
PB: predicated region body
PF: predicated region fallthrough
CT: control target
= control target key end

     0   :  { %10 = vsyncpa [#allocation3], 0  ;;  %s1118_s0 = inlined_call_operand.hbm [shape: bf16[32,128], index: 0, kind: input, shape index: {}]   ;;  %s1119_s1 = inlined_call_operand.hbm [shape: bf16[128,128], index: 1, kind: input, shape index: {}]   ;;  %s1120_s2 = inlined_call_operand.vmem [shape: f32[1,128], index: 2, kind: input, shape index: {}]   ;;  %s1121_s3 = inlined_call_operand.hbm [shape: bf16[128,128], index: 3, kind: input, shape index: {}]   ;;  %s1122_s4 = inlined_call_operand.vmem [shape: f32[1,128], index: 4, kind: input, shape index: {}]   ;;  %s1123_s5 = inlined_call_operand.hbm [shape: f32[32,128], index: 5, kind: output, shape index: {}]  }
   0x1   :  { %12 = vsyncpa [#allocation3 + $0x1], 0 }
   0x2   :  { %13 = vsyncpa [#allocation6], 0 }
   0x3   :  { %14 = vsyncpa [#allocation4], 0 }
   0x4   :  { %16 = vsyncpa [#allocation4 + $0x1], 0  ;;  %s961_s18 = smov 0   ;;  %s963_s19 = smov 0  }
   0x5   :  { %s965_s20 = smov 0   ;;  %s967_s21 = smov 0  }
   0x6 LB: > { %s982_s22 = sadd.s32 4294967295, %s923_s21   ;;  %s581_s23 = sadd.s32 4294967294, %s923_s21   ;;  %s923_s21 = sphi %s967_s21, %s1135_s21   ;;  %s919_s20 = sphi %s965_s20, %s1134_s20   ;;  %s915_s19 = sphi %s963_s19, %s1133_s19   ;;  %s911_s18 = sphi %s961_s18, %s1132_s18  }
   0x7   : > { %p42_p0 = scmp.ne.s32.totalorder %s915_s19, %s911_s18  ;;  %p43_p1 = scmp.eq.s32.totalorder %s982_s22, 0 }
   0x8   : > { %p150_p2 = scmp.eq.s32.totalorder %s982_s22, 1  ;;  %p156_p3 = scmp.eq.s32.totalorder %s581_s23, 1 }
   0x9   : > { %p991_p4 = por %p43_p1, %p42_p0  ;;  %p582_p5 = scmp.ge.s32.totalorder %s923_s21, 1 }
   0xa   : > { %p996_p6 = por %p156_p3, %p42_p0  ;;  %p163_p7 = scmp.lt.s32.totalorder %s923_s21, 3 }
   0xb   : > { %s174_s28 = sshll.u32 %s1119_s1, 4  ;;  %s925_s30 = smov [#allocation5]   ;;  %s175_s28 = int_to_ptr.hbm [resolvable:$true] %s174_s28 }
   0xc   : > { %p1004_p8 = pnand %p582_p5, %p163_p7  ;;  %s176_s6 = sshll.u32 %s925_s30, 4  ;;  %s177_s6 = int_to_ptr.vmem [resolvable:$true] %s176_s6 }
   0xd   : > { %s191_s9 = sshll.u32 %s1121_s3, 4  ;;  %s1124_s10 = smov 64   ;;  %s192_s9 = int_to_ptr.hbm [resolvable:$true] %s191_s9 }
   0xe   : > { %p698_p9 = pneg %p1004_p8  ;;  %s927_s11 = smov 4  }
   0xf   : > { %s928_s12 = smov [#allocation7]   ;;  %s1023_s14 = sadd.s32 1, %s923_s21  }
  0x10   : > { %p699_p10 = pnand %p698_p9, %p43_p1  ;;  %s193_s13 = sshll.u32 %s928_s12, 4  ;;  %s194_s13 = int_to_ptr.vmem [resolvable:$true] %s193_s13 }
  0x11   : > { %s29_s15 = sadd.s32 1, %s919_s20  ;;  %s26_s16 = ssub.s32 %s923_s21, %s1023_s14 }
  0x12   : > { %701 = dma.hbm_to_vmem [thread:$0]  (!%p699_p10), %s175_s28, 1024, %s177_s6, [#allocation6], %s1124_s10, %s1124_s10, %s927_s11  }
  0x13   : > { %704 = dma.hbm_to_vmem [thread:$0]  (!%p699_p10), %s192_s9, 1024, %s194_s13, [#allocation6], %s1124_s10, %s1124_s10, %s927_s11  }
  0x14   : > { %p36_p12 = scmp.ne.s32.totalorder %s919_s20, %s915_s19  ;;  %p27_p13 = scmp.eq.s32.totalorder %s26_s16, 0 }
  0x15   : > { %p37_p0 = scmp.eq.s32.totalorder %s923_s21, 0  ;;  %p715_p5 = scmp.lt.s32.totalorder %s923_s21, 2 }
  0x16   : > { %p1033_p3 = por %p150_p2, %p36_p12  ;;  %s210_s26 = sand.u32 1, %s919_s20  }
  0x17   : > { %s1039_s23 = scalar_select %p27_p13, %s919_s20, %s29_s15  }
  0x18   : > { %p38_p7 = por %p37_p0, %p36_p12  ;;  %s586_s27 = sshll.u32 %s210_s26, 3 }
  0x19   : > { %s667_s28 = sshll.u32 %s923_s21, 3  ;;  %s214_s8 = scalar_lea.vmem [#allocation2], %s586_s27 }
  0x1a   : > { %s219_s7 = scalar_lea.hbm %s1118_s0, %s667_s28  ;;  %s222_s9 = sshll.u32 %s214_s8, 4  ;;  %s223_s9 = int_to_ptr.vmem [resolvable:$true] %s222_s9 }
  0x1b   : > { %s220_s12 = sshll.u32 %s219_s7, 4  ;;  %p1046_p2 = pnand %p715_p5, %p38_p7  ;;  %s221_s12 = int_to_ptr.hbm [resolvable:$true] %s220_s12 }
  0x1c   : > { %s211_s15 = scalar_lea.sflag [#allocation3], %s210_s26  ;;  %s823_s16 = sshra.s32 %s221_s12, 4  ;;  %s824_s16 = int_to_ptr.hbm [resolvable:$true] %s823_s16 }
  0x1d   : > { %s825_s10 = scalar_lea.hbm %s824_s16, 8  ;;  %p827_p10 = pneg %p1046_p2 }
  0x1e   : > { %p826_p9 = scmp.ne.s32.totalorder %s824_s16, %s825_s10  ;;  %s830_s30 = scalar_lea.hbm %s1118_s0, 16 }
  0x1f   : > { %p831_p0 = scmp.lt.s32.totalorder %s824_s16, %s1118_s0  ;;  %p832_p5 = scmp.lt.s32.totalorder %s830_s30, %s825_s10 }
  0x20   : > { %p828_p12 = pnand %p827_p10, %p826_p9 }
  0x21   : > { %p833_p7 = por %p832_p5, %p831_p0 }
  0x22   : > { %p829_p13 = pneg %p828_p12 }
  0x24   : > { %p834_p11 = pnand %p833_p7, %p829_p13 }
  0x26   : > { %837 = shalt.err (!%p834_p11)
}
  0x27   : > { %s1130_s26 = smov 64   ;;  %234 = sbr.rel (%p1004_p8) target bundleno = 378 (0x17a), region = 40 }
  0x28   : > { %708 = dma.hbm_to_vmem [thread:$0]  (!%p1046_p2), %s221_s12, 128, %s223_s9, %s211_s15, %s1130_s26, %s1130_s26, %s927_s11  }
  0x29   : > { %s1066_s8 = sand.u32 (!%p1004_p8), 1, %s915_s19  }
  0x2a   : > { %s590_s16 = sshll.u32 (!%p1004_p8), %s1066_s8, 3  ;;  %s237_s10 = scalar_lea.sflag (!%p1004_p8), [#allocation3], %s1066_s8 }
  0x2b   : > { %s240_s28 = scalar_lea.vmem (!%p1004_p8), [#allocation2], %s590_s16 }
  0x2c   : > { %898 = dma.done.wait (%p991_p4), %s237_s10, 128  }
  0x2d   : > { %900 = vsyncadd (%p991_p4), %s237_s10, 4294967168 }
  0x2e   : > { %902 = dma.done.wait (%p43_p1), [#allocation6], 2048  }
  0x2f   : > { %904 = vsyncadd (%p43_p1), [#allocation6], 4294965248  ;;  %v676_v0 = vld [vmem:[#allocation5 + $0x38] sm:$0xff]  ;;  %v675_v1 = vld [vmem:[#allocation5 + $0x30] sm:$0xff]  ;;  %s593_s11 = sshll.u32 %s1066_s8, 4  ;;  %s685_s13 = sshll.u32 %s982_s22, 4 }
  0x30   : > { %356 = vmatpush.bf16.msra.mxu0 %v676_v0  ;;  %v674_v2 = vld [vmem:[#allocation5 + $0x28] sm:$0xff]  ;;  %v673_v3 = vld [vmem:[#allocation5 + $0x20] sm:$0xff]  ;;  %v672_v4 = vld [vmem:[#allocation5 + $0x18] sm:$0xff]  ;;  %s485_s30 = scalar_lea.hbm %s1123_s5, %s685_s13  ;;  %s277_s6 = scalar_lea.vmem [#allocation8], %s593_s11 }
  0x31   : > { %v671_v5 = vld [vmem:[#allocation5 + $0x10] sm:$0xff]  ;;  %v670_v6 = vld [vmem:[#allocation5 + $0x8] sm:$0xff]  ;;  %v669_v7 = vld [vmem:[#allocation5] sm:$0xff]  ;;  %s486_s7 = sshll.u32 %s277_s6, 4  ;;  %s488_s26 = sshll.u32 %s485_s30, 4  ;;  %s487_s7 = int_to_ptr.vmem [resolvable:$true] %s486_s7  ;;  %s489_s26 = int_to_ptr.hbm [resolvable:$true] %s488_s26 }
  0x32   : > { %v668_v8 = vld [vmem:[%s240_s28] sm:$0xff]  ;;  %v682_v11 = vld [vmem:[#allocation7 + $0x28] sm:$0xff]  ;;  %v681_v12 = vld [vmem:[#allocation7 + $0x20] sm:$0xff]  ;;  %s474_s16 = scalar_lea.sflag [#allocation4], %s1066_s8  ;;  %s867_s10 = sshra.s32 %s489_s26, 4  ;;  %s868_s10 = int_to_ptr.hbm [resolvable:$true] %s867_s10 }
  0x33   : > { %v684_v9 = vld [vmem:[#allocation7 + $0x38] sm:$0xff]  ;;  %v683_v10 = vld [vmem:[#allocation7 + $0x30] sm:$0xff]  ;;  %v678_v15 = vld [vmem:[#allocation7 + $0x8] sm:$0xff]  ;;  %s869_s22 = scalar_lea.hbm %s868_s10, 16  ;;  %s873_s29 = scalar_lea.hbm %s1123_s5, 32 }
  0x34   : > { %357 = vmatpush.bf16.msra.mxu0 %v675_v1  ;;  %457 = vmatpush.bf16.msra.mxu1 %v684_v9  ;;  %v680_v13 = vld [vmem:[#allocation7 + $0x18] sm:$0xff]  ;;  %v679_v14 = vld [vmem:[#allocation7 + $0x10] sm:$0xff]  ;;  %v677_v16 = vld [vmem:[#allocation7] sm:$0xff]  ;;  %p870_p1 = scmp.ne.s32.totalorder %s868_s10, %s869_s22  ;;  %p874_p11 = scmp.lt.s32.totalorder %s868_s10, %s1123_s5 }
  0x35   : > { %v757_v17 = vld [vmem:[%s1120_s2] ss:$0 sm:$0xff]  ;;  %p875_p2 = scmp.lt.s32.totalorder %s873_s29, %s869_s22 }
  0x36   : > { %v758_v41 = vld [vmem:[%s1122_s4] ss:$0 sm:$0xff]  ;;  %p871_p4 = pnand %p870_p1, %p1033_p3 }
  0x37   : > { %p876_p9 = por %p875_p2, %p874_p11 }
  0x38   : > { %358 = vmatpush.bf16.msra.mxu0 %v674_v2  ;;  %458 = vmatpush.bf16.msra.mxu1 %v683_v10  ;;  %p872_p8 = pneg %p871_p4 }
  0x3a   : > { %p877_p10 = pnand %p876_p9, %p872_p8 }
  0x3c   : > { %359 = vmatpush.bf16.msra.mxu0 %v673_v3  ;;  %459 = vmatpush.bf16.msra.mxu1 %v682_v11 }
  0x40   : > { %360 = vmatpush.bf16.msra.mxu0 %v672_v4  ;;  %460 = vmatpush.bf16.msra.mxu1 %v681_v12 }
  0x44   : > { %361 = vmatpush.bf16.msra.mxu0 %v671_v5  ;;  %461 = vmatpush.bf16.msra.mxu1 %v680_v13 }
  0x48   : > { %362 = vmatpush.bf16.msra.mxu0 %v670_v6  ;;  %462 = vmatpush.bf16.msra.mxu1 %v679_v14 }
  0x4c   : > { %363 = vmatpush.bf16.msra.mxu0 %v669_v7  ;;  %463 = vmatpush.bf16.msra.mxu1 %v678_v15 }
  0x4f   : > { %364 = vmatmul.bf16.vlgmr.msra.gmra.mxu0 %v668_v8 }
  0x50   : > { %464 = vmatpush.bf16.msra.mxu1 %v677_v16 }
  0xcc   : > { %v365_v18 = vpop.f32.mrf.mxu0 }
  0xcd   : > { %v366_v19 = vadd.f32 %v757_v17, %v365_v18 }
  0xcf   : > { %v372_v20 = vmul.f32 %v366_v19, %v366_v19  ;;  %v370_v35 = vmul.f32 0.5, %v366_v19 }
  0xd1   : > { %v374_v21 = vmul.f32 %v372_v20, %v366_v19 }
  0xd3   : > { %v376_v22 = vmul.f32 0.044715, %v374_v21 }
  0xd4   : > { %v367_v23 = vpop.f32.mrf.mxu0 }
  0xd5   : > { %v368_v24 = vadd.f32 %v757_v17, %v367_v23  ;;  %v378_v25 = vadd.f32 %v376_v22, %v366_v19 }
  0xd7   : > { %v373_v26 = vmul.f32 %v368_v24, %v368_v24  ;;  %v380_v28 = vmul.f32 0.7978846, %v378_v25  ;;  %v371_v36 = vmul.f32 0.5, %v368_v24 }
  0xd9   : > { %v375_v27 = vmul.f32 %v373_v26, %v368_v24  ;;  %759 = vtanh.f32 %v380_v28 }
  0xdb   : > { %v377_v29 = vmul.f32 0.044715, %v375_v27 }
  0xdd   : > { %v379_v30 = vadd.f32 %v377_v29, %v368_v24 }
  0xdf   : > { %v381_v31 = vmul.f32 0.7978846, %v379_v30  ;;  %v760_v32 = vpop.eup %759 }
  0xe0   : > { %v384_v33 = vadd.f32 1.0, %v760_v32 }
  0xe1   : > { %761 = vtanh.f32 %v381_v31 }
  0xe2   : > { %v386_v38 = vmul.f32 %v384_v33, %v370_v35 }
  0xe7   : > { %v762_v34 = vpop.eup %761 }
  0xe8   : > { %v385_v37 = vadd.f32 1.0, %v762_v34 }
  0xea   : > { %v387_v39 = vmul.f32 %v385_v37, %v371_v36 }
  0xec   : > { %v388_v40 = vpack.c.bf16 %v387_v39, %v386_v38 }
  0xee   : > { %465 = vmatmul.bf16.vlgmr.msra.gmra.mxu1 %v388_v40 }
 0x16b   : > { %v466_v42 = vpop.f32.mrf.mxu1 }
 0x16c   : > { %v467_v43 = vadd.f32 %v758_v41, %v466_v42 }
 0x16e   : > { %471 = vst [vmem:[%s277_s6] sm:$0xff] %v467_v43 }
 0x173   : > { %v468_v44 = vpop.f32.mrf.mxu1 }
 0x174   : > { %v469_v45 = vadd.f32 %v758_v41, %v468_v44 }
 0x176   : > { %472 = vst [vmem:[%s277_s6 + $0x8] sm:$0xff] %v469_v45 }
 0x177   : > { %880 = shalt.err (!%p877_p10)
}
 0x178   : > { %s929_s8 = smov 128   ;;  %s930_s12 = smov 8  }
 0x179   : > { %696 = dma.vmem_to_hbm [thread:$0]  (%p1033_p3), %s487_s7, 256, %s489_s26, %s474_s16, %s929_s8, %s929_s8, %s930_s12  }
 0x17a PF: > { %s503_s13 = sand.u32 1, %s911_s18   ;;  %p1131_p12 = scmp.ge.s32.totalorder %s923_s21, 2 }
 0x17b   : > { %s504_s15 = scalar_lea.sflag [#allocation4], %s503_s13 }
 0x17c   : > { %p710_p13 = pnand %p1131_p12, %p996_p6 }
 0x17e   : > { %p711_p0 = pneg %p710_p13 }
 0x180   : > { %906 = dma.done.wait (%p711_p0), %s504_s15, 256  }
 0x181   : > { %908 = vsyncadd (%p711_p0), %s504_s15, 4294967040  ;;  %p19_p5 = scmp.ge.s32.totalorder %s1023_s14, 4   ;;  %s1132_s18 = smov %s915_s19 }
 0x182   : > { %s1133_s19 = smov %s919_s20  ;;  %s1134_s20 = smov %s1039_s23 }
 0x183   : > { %s1135_s21 = smov %s1023_s14  ;;  %21 = sbr.rel (!%p19_p5) target bundleno = 6 (0x6), region = 93 }
 0x188   :  { %510 = vsyncpa [#allocation3], 1 }
 0x189   :  { %512 = vsyncpa [#allocation3 + $0x1], 1 }
 0x18a   :  { %513 = vsyncpa [#allocation6], 1 }
 0x18b   :  { %514 = vsyncpa [#allocation4], 1 }
 0x18c   :  { %516 = vsyncpa [#allocation4 + $0x1], 1 }

// kernel: tpu_custom_call.1
= control target key start
LH: loop header
LB: loop body
LE: loop exit
PB: predicated region body
PF: predicated region fallthrough
CT: control target
= control target key end

     0   :  { %10 = vsyncpa [#allocation3], 0  ;;  %s1118_s0 = inlined_call_operand.hbm [shape: bf16[32,128], index: 0, kind: input, shape index: {}]   ;;  %s1119_s1 = inlined_call_operand.hbm [shape: bf16[128,128], index: 1, kind: input, shape index: {}]   ;;  %s1120_s2 = inlined_call_operand.vmem [shape: f32[1,128], index: 2, kind: input, shape index: {}]   ;;  %s1121_s3 = inlined_call_operand.hbm [shape: bf16[128,128], index: 3, kind: input, shape index: {}]   ;;  %s1122_s4 = inlined_call_operand.vmem [shape: f32[1,128], index: 4, kind: input, shape index: {}]   ;;  %s1123_s5 = inlined_call_operand.hbm [shape: f32[32,128], index: 5, kind: output, shape index: {}]  }
   0x1   :  { %12 = vsyncpa [#allocation3 + $0x1], 0 }
   0x2   :  { %13 = vsyncpa [#allocation6], 0 }
   0x3   :  { %14 = vsyncpa [#allocation4], 0 }
   0x4   :  { %16 = vsyncpa [#allocation4 + $0x1], 0  ;;  %s961_s18 = smov 0   ;;  %s963_s19 = smov 0  }
   0x5   :  { %s965_s20 = smov 0   ;;  %s967_s21 = smov 0  }
   0x6 LB: > { %s982_s22 = sadd.s32 4294967295, %s923_s21   ;;  %s581_s23 = sadd.s32 4294967294, %s923_s21   ;;  %s923_s21 = sphi %s967_s21, %s1135_s21   ;;  %s919_s20 = sphi %s965_s20, %s1134_s20   ;;  %s915_s19 = sphi %s963_s19, %s1133_s19   ;;  %s911_s18 = sphi %s961_s18, %s1132_s18  }
   0x7   : > { %p42_p0 = scmp.ne.s32.totalorder %s915_s19, %s911_s18  ;;  %p43_p1 = scmp.eq.s32.totalorder %s982_s22, 0 }
   0x8   : > { %p150_p2 = scmp.eq.s32.totalorder %s982_s22, 1  ;;  %p156_p3 = scmp.eq.s32.totalorder %s581_s23, 1 }
   0x9   : > { %p991_p4 = por %p43_p1, %p42_p0  ;;  %p582_p5 = scmp.ge.s32.totalorder %s923_s21, 1 }
   0xa   : > { %p996_p6 = por %p156_p3, %p42_p0  ;;  %p163_p7 = scmp.lt.s32.totalorder %s923_s21, 3 }
   0xb   : > { %s174_s28 = sshll.u32 %s1119_s1, 4  ;;  %s925_s30 = smov [#allocation5]   ;;  %s175_s28 = int_to_ptr.hbm [resolvable:$true] %s174_s28 }
   0xc   : > { %p1004_p8 = pnand %p582_p5, %p163_p7  ;;  %s176_s6 = sshll.u32 %s925_s30, 4  ;;  %s177_s6 = int_to_ptr.vmem [resolvable:$true] %s176_s6 }
   0xd   : > { %s191_s9 = sshll.u32 %s1121_s3, 4  ;;  %s1124_s10 = smov 64   ;;  %s192_s9 = int_to_ptr.hbm [resolvable:$true] %s191_s9 }
   0xe   : > { %p698_p9 = pneg %p1004_p8  ;;  %s927_s11 = smov 4  }
   0xf   : > { %s928_s12 = smov [#allocation7]   ;;  %s1023_s14 = sadd.s32 1, %s923_s21  }
  0x10   : > { %p699_p10 = pnand %p698_p9, %p43_p1  ;;  %s193_s13 = sshll.u32 %s928_s12, 4  ;;  %s194_s13 = int_to_ptr.vmem [resolvable:$true] %s193_s13 }
  0x11   : > { %s29_s15 = sadd.s32 1, %s919_s20  ;;  %s26_s16 = ssub.s32 %s923_s21, %s1023_s14 }
  0x12   : > { %701 = dma.hbm_to_vmem [thread:$0]  (!%p699_p10), %s175_s28, 1024, %s177_s6, [#allocation6], %s1124_s10, %s1124_s10, %s927_s11  }
  0x13   : > { %704 = dma.hbm_to_vmem [thread:$0]  (!%p699_p10), %s192_s9, 1024, %s194_s13, [#allocation6], %s1124_s10, %s1124_s10, %s927_s11  }
  0x14   : > { %p36_p12 = scmp.ne.s32.totalorder %s919_s20, %s915_s19  ;;  %p27_p13 = scmp.eq.s32.totalorder %s26_s16, 0 }
  0x15   : > { %p37_p0 = scmp.eq.s32.totalorder %s923_s21, 0  ;;  %p715_p5 = scmp.lt.s32.totalorder %s923_s21, 2 }
  0x16   : > { %p1033_p3 = por %p150_p2, %p36_p12  ;;  %s210_s26 = sand.u32 1, %s919_s20  }
  0x17   : > { %s1039_s23 = scalar_select %p27_p13, %s919_s20, %s29_s15  }
  0x18   : > { %p38_p7 = por %p37_p0, %p36_p12  ;;  %s586_s27 = sshll.u32 %s210_s26, 3 }
  0x19   : > { %s667_s28 = sshll.u32 %s923_s21, 3  ;;  %s214_s8 = scalar_lea.vmem [#allocation2], %s586_s27 }
  0x1a   : > { %s219_s7 = scalar_lea.hbm %s1118_s0, %s667_s28  ;;  %s222_s9 = sshll.u32 %s214_s8, 4  ;;  %s223_s9 = int_to_ptr.vmem [resolvable:$true] %s222_s9 }
  0x1b   : > { %s220_s12 = sshll.u32 %s219_s7, 4  ;;  %p1046_p2 = pnand %p715_p5, %p38_p7  ;;  %s221_s12 = int_to_ptr.hbm [resolvable:$true] %s220_s12 }
  0x1c   : > { %s211_s15 = scalar_lea.sflag [#allocation3], %s210_s26  ;;  %s823_s16 = sshra.s32 %s221_s12, 4  ;;  %s824_s16 = int_to_ptr.hbm [resolvable:$true] %s823_s16 }
  0x1d   : > { %s825_s10 = scalar_lea.hbm %s824_s16, 8  ;;  %p827_p10 = pneg %p1046_p2 }
  0x1e   : > { %p826_p9 = scmp.ne.s32.totalorder %s824_s16, %s825_s10  ;;  %s830_s30 = scalar_lea.hbm %s1118_s0, 16 }
  0x1f   : > { %p831_p0 = scmp.lt.s32.totalorder %s824_s16, %s1118_s0  ;;  %p832_p5 = scmp.lt.s32.totalorder %s830_s30, %s825_s10 }
  0x20   : > { %p828_p12 = pnand %p827_p10, %p826_p9 }
  0x21   : > { %p833_p7 = por %p832_p5, %p831_p0 }
  0x22   : > { %p829_p13 = pneg %p828_p12 }
  0x24   : > { %p834_p11 = pnand %p833_p7, %p829_p13 }
  0x26   : > { %837 = shalt.err (!%p834_p11)
}
  0x27   : > { %s1130_s26 = smov 64   ;;  %234 = sbr.rel (%p1004_p8) target bundleno = 378 (0x17a), region = 40 }
  0x28   : > { %708 = dma.hbm_to_vmem [thread:$0]  (!%p1046_p2), %s221_s12, 128, %s223_s9, %s211_s15, %s1130_s26, %s1130_s26, %s927_s11  }
  0x29   : > { %s1066_s8 = sand.u32 (!%p1004_p8), 1, %s915_s19  }
  0x2a   : > { %s590_s16 = sshll.u32 (!%p1004_p8), %s1066_s8, 3  ;;  %s237_s10 = scalar_lea.sflag (!%p1004_p8), [#allocation3], %s1066_s8 }
  0x2b   : > { %s240_s28 = scalar_lea.vmem (!%p1004_p8), [#allocation2], %s590_s16 }
  0x2c   : > { %898 = dma.done.wait (%p991_p4), %s237_s10, 128  }
  0x2d   : > { %900 = vsyncadd (%p991_p4), %s237_s10, 4294967168 }
  0x2e   : > { %902 = dma.done.wait (%p43_p1), [#allocation6], 2048  }
  0x2f   : > { %904 = vsyncadd (%p43_p1), [#allocation6], 4294965248  ;;  %v676_v0 = vld [vmem:[#allocation5 + $0x38] sm:$0xff]  ;;  %v675_v1 = vld [vmem:[#allocation5 + $0x30] sm:$0xff]  ;;  %s593_s11 = sshll.u32 %s1066_s8, 4  ;;  %s685_s13 = sshll.u32 %s982_s22, 4 }
  0x30   : > { %356 = vmatpush.bf16.msra.mxu0 %v676_v0  ;;  %v674_v2 = vld [vmem:[#allocation5 + $0x28] sm:$0xff]  ;;  %v673_v3 = vld [vmem:[#allocation5 + $0x20] sm:$0xff]  ;;  %v672_v4 = vld [vmem:[#allocation5 + $0x18] sm:$0xff]  ;;  %s485_s30 = scalar_lea.hbm %s1123_s5, %s685_s13  ;;  %s277_s6 = scalar_lea.vmem [#allocation8], %s593_s11 }
  0x31   : > { %v671_v5 = vld [vmem:[#allocation5 + $0x10] sm:$0xff]  ;;  %v670_v6 = vld [vmem:[#allocation5 + $0x8] sm:$0xff]  ;;  %v669_v7 = vld [vmem:[#allocation5] sm:$0xff]  ;;  %s486_s7 = sshll.u32 %s277_s6, 4  ;;  %s488_s26 = sshll.u32 %s485_s30, 4  ;;  %s487_s7 = int_to_ptr.vmem [resolvable:$true] %s486_s7  ;;  %s489_s26 = int_to_ptr.hbm [resolvable:$true] %s488_s26 }
  0x32   : > { %v668_v8 = vld [vmem:[%s240_s28] sm:$0xff]  ;;  %v682_v11 = vld [vmem:[#allocation7 + $0x28] sm:$0xff]  ;;  %v681_v12 = vld [vmem:[#allocation7 + $0x20] sm:$0xff]  ;;  %s474_s16 = scalar_lea.sflag [#allocation4], %s1066_s8  ;;  %s867_s10 = sshra.s32 %s489_s26, 4  ;;  %s868_s10 = int_to_ptr.hbm [resolvable:$true] %s867_s10 }
  0x33   : > { %v684_v9 = vld [vmem:[#allocation7 + $0x38] sm:$0xff]  ;;  %v683_v10 = vld [vmem:[#allocation7 + $0x30] sm:$0xff]  ;;  %v678_v15 = vld [vmem:[#allocation7 + $0x8] sm:$0xff]  ;;  %s869_s22 = scalar_lea.hbm %s868_s10, 16  ;;  %s873_s29 = scalar_lea.hbm %s1123_s5, 32 }
  0x34   : > { %357 = vmatpush.bf16.msra.mxu0 %v675_v1  ;;  %457 = vmatpush.bf16.msra.mxu1 %v684_v9  ;;  %v680_v13 = vld [vmem:[#allocation7 + $0x18] sm:$0xff]  ;;  %v679_v14 = vld [vmem:[#allocation7 + $0x10] sm:$0xff]  ;;  %v677_v16 = vld [vmem:[#allocation7] sm:$0xff]  ;;  %p870_p1 = scmp.ne.s32.totalorder %s868_s10, %s869_s22  ;;  %p874_p11 = scmp.lt.s32.totalorder %s868_s10, %s1123_s5 }
  0x35   : > { %v757_v17 = vld [vmem:[%s1120_s2] ss:$0 sm:$0xff]  ;;  %p875_p2 = scmp.lt.s32.totalorder %s873_s29, %s869_s22 }
  0x36   : > { %v758_v41 = vld [vmem:[%s1122_s4] ss:$0 sm:$0xff]  ;;  %p871_p4 = pnand %p870_p1, %p1033_p3 }
  0x37   : > { %p876_p9 = por %p875_p2, %p874_p11 }
  0x38   : > { %358 = vmatpush.bf16.msra.mxu0 %v674_v2  ;;  %458 = vmatpush.bf16.msra.mxu1 %v683_v10  ;;  %p872_p8 = pneg %p871_p4 }
  0x3a   : > { %p877_p10 = pnand %p876_p9, %p872_p8 }
  0x3c   : > { %359 = vmatpush.bf16.msra.mxu0 %v673_v3  ;;  %459 = vmatpush.bf16.msra.mxu1 %v682_v11 }
  0x40   : > { %360 = vmatpush.bf16.msra.mxu0 %v672_v4  ;;  %460 = vmatpush.bf16.msra.mxu1 %v681_v12 }
  0x44   : > { %361 = vmatpush.bf16.msra.mxu0 %v671_v5  ;;  %461 = vmatpush.bf16.msra.mxu1 %v680_v13 }
  0x48   : > { %362 = vmatpush.bf16.msra.mxu0 %v670_v6  ;;  %462 = vmatpush.bf16.msra.mxu1 %v679_v14 }
  0x4c   : > { %363 = vmatpush.bf16.msra.mxu0 %v669_v7  ;;  %463 = vmatpush.bf16.msra.mxu1 %v678_v15 }
  0x4f   : > { %364 = vmatmul.bf16.vlgmr.msra.gmra.mxu0 %v668_v8 }
  0x50   : > { %464 = vmatpush.bf16.msra.mxu1 %v677_v16 }
  0xcc   : > { %v365_v18 = vpop.f32.mrf.mxu0 }
  0xcd   : > { %v366_v19 = vadd.f32 %v757_v17, %v365_v18 }
  0xcf   : > { %v372_v20 = vmul.f32 %v366_v19, %v366_v19  ;;  %v370_v35 = vmul.f32 0.5, %v366_v19 }
  0xd1   : > { %v374_v21 = vmul.f32 %v372_v20, %v366_v19 }
  0xd3   : > { %v376_v22 = vmul.f32 0.044715, %v374_v21 }
  0xd4   : > { %v367_v23 = vpop.f32.mrf.mxu0 }
  0xd5   : > { %v368_v24 = vadd.f32 %v757_v17, %v367_v23  ;;  %v378_v25 = vadd.f32 %v376_v22, %v366_v19 }
  0xd7   : > { %v373_v26 = vmul.f32 %v368_v24, %v368_v24  ;;  %v380_v28 = vmul.f32 0.7978846, %v378_v25  ;;  %v371_v36 = vmul.f32 0.5, %v368_v24 }
  0xd9   : > { %v375_v27 = vmul.f32 %v373_v26, %v368_v24  ;;  %759 = vtanh.f32 %v380_v28 }
  0xdb   : > { %v377_v29 = vmul.f32 0.044715, %v375_v27 }
  0xdd   : > { %v379_v30 = vadd.f32 %v377_v29, %v368_v24 }
  0xdf   : > { %v381_v31 = vmul.f32 0.7978846, %v379_v30  ;;  %v760_v32 = vpop.eup %759 }
  0xe0   : > { %v384_v33 = vadd.f32 1.0, %v760_v32 }
  0xe1   : > { %761 = vtanh.f32 %v381_v31 }
  0xe2   : > { %v386_v38 = vmul.f32 %v384_v33, %v370_v35 }
  0xe7   : > { %v762_v34 = vpop.eup %761 }
  0xe8   : > { %v385_v37 = vadd.f32 1.0, %v762_v34 }
  0xea   : > { %v387_v39 = vmul.f32 %v385_v37, %v371_v36 }
  0xec   : > { %v388_v40 = vpack.c.bf16 %v387_v39, %v386_v38 }
  0xee   : > { %465 = vmatmul.bf16.vlgmr.msra.gmra.mxu1 %v388_v40 }
 0x16b   : > { %v466_v42 = vpop.f32.mrf.mxu1 }
 0x16c   : > { %v467_v43 = vadd.f32 %v758_v41, %v466_v42 }
 0x16e   : > { %471 = vst [vmem:[%s277_s6] sm:$0xff] %v467_v43 }
 0x173   : > { %v468_v44 = vpop.f32.mrf.mxu1 }
 0x174   : > { %v469_v45 = vadd.f32 %v758_v41, %v468_v44 }
 0x176   : > { %472 = vst [vmem:[%s277_s6 + $0x8] sm:$0xff] %v469_v45 }
 0x177   : > { %880 = shalt.err (!%p877_p10)
}
 0x178   : > { %s929_s8 = smov 128   ;;  %s930_s12 = smov 8  }
 0x179   : > { %696 = dma.vmem_to_hbm [thread:$0]  (%p1033_p3), %s487_s7, 256, %s489_s26, %s474_s16, %s929_s8, %s929_s8, %s930_s12  }
 0x17a PF: > { %s503_s13 = sand.u32 1, %s911_s18   ;;  %p1131_p12 = scmp.ge.s32.totalorder %s923_s21, 2 }
 0x17b   : > { %s504_s15 = scalar_lea.sflag [#allocation4], %s503_s13 }
 0x17c   : > { %p710_p13 = pnand %p1131_p12, %p996_p6 }
 0x17e   : > { %p711_p0 = pneg %p710_p13 }
 0x180   : > { %906 = dma.done.wait (%p711_p0), %s504_s15, 256  }
 0x181   : > { %908 = vsyncadd (%p711_p0), %s504_s15, 4294967040  ;;  %p19_p5 = scmp.ge.s32.totalorder %s1023_s14, 4   ;;  %s1132_s18 = smov %s915_s19 }
 0x182   : > { %s1133_s19 = smov %s919_s20  ;;  %s1134_s20 = smov %s1039_s23 }
 0x183   : > { %s1135_s21 = smov %s1023_s14  ;;  %21 = sbr.rel (!%p19_p5) target bundleno = 6 (0x6), region = 93 }
 0x188   :  { %510 = vsyncpa [#allocation3], 1 }
 0x189   :  { %512 = vsyncpa [#allocation3 + $0x1], 1 }
 0x18a   :  { %513 = vsyncpa [#allocation6], 1 }
 0x18b   :  { %514 = vsyncpa [#allocation4], 1 }
 0x18c   :  { %516 = vsyncpa [#allocation4 + $0x1], 1 }

</bundles_post_ra>
